<compile_context>
chip_gen: v5e
topology: v5e:2x2
jax: 0.10.0
libtpu: 0.0.40
codegen_flags: <defaults>
</compile_context>

<pallas_src>
import jax
import jax.numpy as jnp
from jax.experimental import pallas as pl
from jax.experimental.pallas import tpu as pltpu


# ----------------------------------------------------------------------------
# Kernel
# ----------------------------------------------------------------------------
def classifier_kernel(
    x_ref,                  # (TB, 2*C_in)  bf16   -- 2 batch rows packed per row
    w0_ref, b0_ref,         # (2*C_in, 4*C_h) bf16, (1, 4*C_h) f32
    w1_ref, b1_ref,         # (2*C_h, 4*C_h)  bf16, (1, 4*C_h) f32
    w23_ref,                # (2*C_h, 2*C_h)  bf16
    wl_ref, bl_ref,         # (2*C_h, 2*Npad) bf16, (1, 2*Npad) f32
    out_ref,                # (TB, 2*Npad)    f32
):
    ch2 = w23_ref.shape[0]          # packed hidden width = 2 * C_h
    x = x_ref[...]                  # bf16

    # Node-1 pre-act (both packed rows) and node-2's x-contribution in a
    # single fused MXU push.  Column layout: [w01_a | w01_b | .5w02_a | .5w02_b]
    # b0 = [b01 | b01 | .5(b02+b12) | .5(b02+b12)]
    y0 = jnp.dot(x, w0_ref[...], preferred_element_type=jnp.float32) + b0_ref[...]
    s1 = jnp.maximum(y0[:, :ch2], 0.0)                       # relu (packed, f32)

    # Node-2's s1-contribution and node-3's s1-contribution, fused.
    # b1 = [0 | 0 | .5(b13+b23) | .5(b13+b23)]
    y1 = jnp.dot(s1.astype(jnp.bfloat16), w1_ref[...],
                 preferred_element_type=jnp.float32) + b1_ref[...]
    s2 = jnp.tanh(y0[:, ch2:] + y1[:, :ch2])                 # tanh (packed, f32)

    e23 = jnp.dot(s2.astype(jnp.bfloat16), w23_ref[...],
                  preferred_element_type=jnp.float32)
    s3 = jax.nn.sigmoid(y1[:, ch2:] + e23)                   # sigmoid (packed, f32)

    # out = relu(mean(s1,s2,s3)) @ wl + bl; the 1/3 is folded into wl
    # (relu(a/3) @ wl == relu(a) @ (wl/3)).
    h = jnp.maximum(s1 + s2 + s3, 0.0)
    out_ref[...] = (jnp.dot(h.astype(jnp.bfloat16), wl_ref[...],
                            preferred_element_type=jnp.float32) + bl_ref[...])


# ----------------------------------------------------------------------------
# Wrapper
# ----------------------------------------------------------------------------
def train_classifier_forward(x, fused, num_class, *, tb=4096):
    """x: (B, C_in) float32.  fused: dict from fuse_params().  Returns (B, num_class)."""
    B, C_in = x.shape
    ch2 = fused["w23"].shape[0]          # 2 * C_h
    npad2 = fused["wl"].shape[1]         # 2 * Npad (multiple of 128)
    npad = npad2 // 2

    # Pad batch to even, pack 2 rows per lane-row, cast to bf16 (MXU operand +
    # halved HBM read).
    if B % 2:
        x = jnp.concatenate([x, jnp.zeros((1, C_in), x.dtype)], axis=0)
    bp = x.shape[0] // 2
    xp = x.reshape(bp, 2 * C_in).astype(jnp.bfloat16)

    # Batch tile (packed rows).  Biggest sensible tile; if everything fits in
    # one tile, still split into >=2 grid steps so both TensorCores get work
    # on v7x.  Sublane-aligned (multiple of 8) unless full-extent.
    if bp <= tb:
        if bp >= 16:
            tb_eff = ((pl.cdiv(bp, 2) + 7) // 8) * 8
        else:
            tb_eff = bp
    else:
        tb_eff = max(8, (tb // 8) * 8)
    grid = (pl.cdiv(bp, tb_eff),)

    weights = [fused[n] for n in ("w0", "b0", "w1", "b1", "w23", "wl", "bl")]

    x_spec = pl.BlockSpec((tb_eff, 2 * C_in), lambda i: (i, 0))
    out_spec = pl.BlockSpec((tb_eff, npad2), lambda i: (i, 0))
    # Weights/biases: constant index_map -> stay VMEM-resident across steps.
    w_specs = [pl.BlockSpec(w.shape, lambda i: (0, 0)) for w in weights]

    # Advisory cost estimate for XLA's scheduler.
    c_h = ch2 // 2
    flops = 2 * 2 * bp * (C_in * 2 * c_h + c_h * 2 * c_h + c_h * c_h + c_h * npad)
    transcendentals = 2 * 2 * bp * c_h          # tanh + sigmoid
    wbytes = sum(int(w.size) * w.dtype.itemsize for w in weights)
    bytes_accessed = int(xp.size) * 2 + 4 * bp * npad2 + wbytes

    out = pl.pallas_call(
        classifier_kernel,
        out_shape=jax.ShapeDtypeStruct((bp, npad2), jnp.float32),
        grid=grid,
        in_specs=[x_spec] + w_specs,
        out_specs=out_spec,
        compiler_params=pltpu.CompilerParams(
            dimension_semantics=("parallel",)),     # megacore sharding on v7x
        cost_estimate=pl.CostEstimate(
            flops=int(flops),
            transcendentals=int(transcendentals),
            bytes_accessed=int(bytes_accessed)),
    )(xp, *weights)

    # Unpack the 2-row packing and drop head padding / batch padding.
    return out.reshape(2 * bp, npad)[:B, :num_class]


# ----------------------------------------------------------------------------
# Parameters
# ----------------------------------------------------------------------------
def init_params(key, C_in, num_class):
    """Per-edge params mimicking nn.Linear's uniform(-1/sqrt(fan_in), ...).
    Stored pre-transposed: (in, out); biases as (1, out)."""
    C_h = C_in // 2

    def lin(k, fan_in, fan_out):
        kw, kb = jax.random.split(k)
        bound = 1.0 / jnp.sqrt(float(fan_in))
        w = jax.random.uniform(kw, (fan_in, fan_out), jnp.float32, -bound, bound)
        b = jax.random.uniform(kb, (1, fan_out), jnp.float32, -bound, bound)
        return w, b

    ks = jax.random.split(key, 6)
    w01, b01 = lin(ks[0], C_in, C_h)
    w02, b02 = lin(ks[1], C_in, C_h)
    w12, b12 = lin(ks[2], C_h, C_h)
    w13, b13 = lin(ks[3], C_h, C_h)
    w23, b23 = lin(ks[4], C_h, C_h)
    wl, bl = lin(ks[5], C_h, num_class)
    return dict(
        w01=w01, b01=b01, w02=w02, b02=b02, w12=w12, b12=b12,
        w13=w13, b13=b13, w23=w23, b23=b23, wl=wl, bl=bl,
    )


def _blockdiag2(w):
    """(k, n) -> (2k, 2n) block-diagonal [[w, 0], [0, w]]."""
    k, n = w.shape
    z = jnp.zeros((k, n), w.dtype)
    top = jnp.concatenate([w, z], axis=1)
    bot = jnp.concatenate([z, w], axis=1)
    return jnp.concatenate([top, bot], axis=0)


def fuse_params(raw):
    """One-time fusion/folding + R=2 row-packing of the per-edge params.

    Builds 2x block-diagonal weights (columns permuted so the packed halves of
    y0/y1 stay contiguous), folds the 0.5 edge-average factors, pairs biases,
    folds the 1/3 state-mean into wl, pads the head to a lane-dense width, and
    stores weights in bf16 (biases stay f32)."""
    C_h = raw["w01"].shape[1]
    num_class = raw["wl"].shape[1]
    npad = ((num_class + 63) // 64) * 64        # 2*npad is a multiple of 128

    # x-stage: [w01_a | w01_b | 0.5*w02_a | 0.5*w02_b]
    w0 = jnp.concatenate([_blockdiag2(raw["w01"]),
                          _blockdiag2(0.5 * raw["w02"])], axis=1)
    b01 = raw["b01"]
    b02f = 0.5 * (raw["b02"] + raw["b12"])
    b0 = jnp.concatenate([b01, b01, b02f, b02f], axis=1)

    # s1-stage: [0.5*w12_a | 0.5*w12_b | 0.5*w13_a | 0.5*w13_b]
    w1 = jnp.concatenate([_blockdiag2(0.5 * raw["w12"]),
                          _blockdiag2(0.5 * raw["w13"])], axis=1)
    b13f = 0.5 * (raw["b13"] + raw["b23"])
    zb = jnp.zeros_like(b13f)
    b1 = jnp.concatenate([zb, zb, b13f, b13f], axis=1)

    # s2-stage
    w23 = _blockdiag2(0.5 * raw["w23"])

    # head: fold 1/3, pad to lane-dense width, block-diagonalize
    wl_pad = jnp.concatenate(
        [raw["wl"] / 3.0, jnp.zeros((C_h, npad - num_class), jnp.float32)], axis=1)
    bl_pad = jnp.concatenate(
        [raw["bl"], jnp.zeros((1, npad - num_class), jnp.float32)], axis=1)
    wl = _blockdiag2(wl_pad)
    bl = jnp.concatenate([bl_pad, bl_pad], axis=1)

    return dict(
        w0=w0.astype(jnp.bfloat16), b0=b0,
        w1=w1.astype(jnp.bfloat16), b1=b1,
        w23=w23.astype(jnp.bfloat16),
        wl=wl.astype(jnp.bfloat16), bl=bl,
    )


# ----------------------------------------------------------------------------
# Pure-JAX reference (mirrors the PyTorch forward exactly, f32)
# ----------------------------------------------------------------------------
def reference_forward(x, raw):
    def lin(v, w, b):
        return v @ w + b
    s1 = jax.nn.relu(lin(x, raw["w01"], raw["b01"]))
    s2 = jnp.tanh((lin(x, raw["w02"], raw["b02"])
                   + lin(s1, raw["w12"], raw["b12"])) * 0.5)
    s3 = jax.nn.sigmoid((lin(s1, raw["w13"], raw["b13"])
                         + lin(s2, raw["w23"], raw["b23"])) * 0.5)
    out = jax.nn.relu((s1 + s2 + s3) / 3.0)
    return lin(out, raw["wl"], raw["bl"])


if __name__ == "__main__":
    B, C_in, num_class = 256, 64, 8

    key = jax.random.PRNGKey(0)
    k_x, k_p = jax.random.split(key)
    x = jax.random.normal(k_x, (B, C_in), jnp.float32)
    raw = init_params(k_p, C_in, num_class)
    fused = fuse_params(raw)

    # Bp = 128 packed rows -> tile 64 -> grid=(2,): exercises the batch-tiled
    # pipeline and the >=2-grid-step megacore split at small shapes.
    out = train_classifier_forward(x, fused, num_class)
    jax.block_until_ready(out)
    assert out.shape == (B, num_class)

    ref = reference_forward(x, raw)
    # bf16 MXU operands -> ~1e-2 relative tolerance vs. the f32 reference.
    assert bool(jnp.allclose(out, ref, rtol=3e-2, atol=3e-2))
    print("KERNEL_OK")
</pallas_src>

<mosaic_0001>
module attributes {stable_mosaic.version = 11 : i64} {
  func.func @classifier_kernel(%arg0: i32, %arg1: memref<64x128xbf16, #tpu.memory_space<vmem>>, %arg2: memref<128x128xbf16, #tpu.memory_space<vmem>>, %arg3: memref<1x128xf32, #tpu.memory_space<vmem>>, %arg4: memref<64x128xbf16, #tpu.memory_space<vmem>>, %arg5: memref<1x128xf32, #tpu.memory_space<vmem>>, %arg6: memref<64x64xbf16, #tpu.memory_space<vmem>>, %arg7: memref<64x128xbf16, #tpu.memory_space<vmem>>, %arg8: memref<1x128xf32, #tpu.memory_space<vmem>>, %arg9: memref<64x128xf32, #tpu.memory_space<vmem>>) attributes {dimension_semantics = [#tpu.dimension_semantics<parallel>], iteration_bounds = array<i64: 2>, scalar_prefetch = 0 : i64, scratch_operands = 0 : i64, tpu.core_type = #tpu.core_type<tc>, window_params = [{transform_indices = @transform_0, window_bounds = array<i64: 64, 128>}, {pipeline_mode = #tpu.pipeline_mode<synchronous>, transform_indices = @transform_1, window_bounds = array<i64: 128, 128>}, {pipeline_mode = #tpu.pipeline_mode<synchronous>, transform_indices = @transform_2, window_bounds = array<i64: 1, 128>}, {pipeline_mode = #tpu.pipeline_mode<synchronous>, transform_indices = @transform_3, window_bounds = array<i64: 64, 128>}, {pipeline_mode = #tpu.pipeline_mode<synchronous>, transform_indices = @transform_4, window_bounds = array<i64: 1, 128>}, {pipeline_mode = #tpu.pipeline_mode<synchronous>, transform_indices = @transform_5, window_bounds = array<i64: 64, 64>}, {pipeline_mode = #tpu.pipeline_mode<synchronous>, transform_indices = @transform_6, window_bounds = array<i64: 64, 128>}, {pipeline_mode = #tpu.pipeline_mode<synchronous>, transform_indices = @transform_7, window_bounds = array<i64: 1, 128>}, {transform_indices = @transform_8, window_bounds = array<i64: 64, 128>}]} {
    %c0 = arith.constant 0 : index
    %c0_0 = arith.constant 0 : index
    %0 = vector.load %arg1[%c0, %c0_0] : memref<64x128xbf16, #tpu.memory_space<vmem>>, vector<64x128xbf16>
    %c0_1 = arith.constant 0 : index
    %c0_2 = arith.constant 0 : index
    %1 = vector.load %arg2[%c0_1, %c0_2] : memref<128x128xbf16, #tpu.memory_space<vmem>>, vector<128x128xbf16>
    %cst = arith.constant dense<0.000000e+00> : vector<64x128xf32>
    %2 = tpu.matmul %0, %1, %cst {dimension_numbers = #tpu.dot_dimension_numbers<[1], [0], [0], [1], [0, 0, 1, 1], [], []>} : vector<64x128xbf16>, vector<128x128xbf16>, vector<64x128xf32> -> vector<64x128xf32>
    %c0_3 = arith.constant 0 : index
    %c0_4 = arith.constant 0 : index
    %3 = vector.load %arg3[%c0_3, %c0_4] : memref<1x128xf32, #tpu.memory_space<vmem>>, vector<1x128xf32>
    %4 = vector.broadcast %3 : vector<1x128xf32> to vector<64x128xf32>
    %5 = arith.addf %2, %4 : vector<64x128xf32>
    %6 = vector.extract_strided_slice %5 {offsets = [0, 0], sizes = [64, 64], strides = [1, 1]} : vector<64x128xf32> to vector<64x64xf32>
    %cst_5 = arith.constant 0.000000e+00 : f32
    %7 = vector.broadcast %cst_5 : f32 to vector<64x64xf32>
    %8 = arith.maximumf %6, %7 : vector<64x64xf32>
    %9 = arith.truncf %8 : vector<64x64xf32> to vector<64x64xbf16>
    %c0_6 = arith.constant 0 : index
    %c0_7 = arith.constant 0 : index
    %10 = vector.load %arg4[%c0_6, %c0_7] : memref<64x128xbf16, #tpu.memory_space<vmem>>, vector<64x128xbf16>
    %cst_8 = arith.constant dense<0.000000e+00> : vector<64x128xf32>
    %11 = tpu.matmul %9, %10, %cst_8 {dimension_numbers = #tpu.dot_dimension_numbers<[1], [0], [0], [1], [0, 0, 1, 1], [], []>} : vector<64x64xbf16>, vector<64x128xbf16>, vector<64x128xf32> -> vector<64x128xf32>
    %c0_9 = arith.constant 0 : index
    %c0_10 = arith.constant 0 : index
    %12 = vector.load %arg5[%c0_9, %c0_10] : memref<1x128xf32, #tpu.memory_space<vmem>>, vector<1x128xf32>
    %13 = vector.broadcast %12 : vector<1x128xf32> to vector<64x128xf32>
    %14 = arith.addf %11, %13 : vector<64x128xf32>
    %15 = vector.extract_strided_slice %5 {offsets = [0, 64], sizes = [64, 64], strides = [1, 1]} : vector<64x128xf32> to vector<64x64xf32>
    %16 = vector.extract_strided_slice %14 {offsets = [0, 0], sizes = [64, 64], strides = [1, 1]} : vector<64x128xf32> to vector<64x64xf32>
    %17 = arith.addf %15, %16 : vector<64x64xf32>
    %18 = math.tanh %17 : vector<64x64xf32>
    %19 = arith.truncf %18 : vector<64x64xf32> to vector<64x64xbf16>
    %c0_11 = arith.constant 0 : index
    %c0_12 = arith.constant 0 : index
    %20 = vector.load %arg6[%c0_11, %c0_12] : memref<64x64xbf16, #tpu.memory_space<vmem>>, vector<64x64xbf16>
    %cst_13 = arith.constant dense<0.000000e+00> : vector<64x64xf32>
    %21 = tpu.matmul %19, %20, %cst_13 {dimension_numbers = #tpu.dot_dimension_numbers<[1], [0], [0], [1], [0, 0, 1, 1], [], []>} : vector<64x64xbf16>, vector<64x64xbf16>, vector<64x64xf32> -> vector<64x64xf32>
    %22 = vector.extract_strided_slice %14 {offsets = [0, 64], sizes = [64, 64], strides = [1, 1]} : vector<64x128xf32> to vector<64x64xf32>
    %23 = arith.addf %22, %21 : vector<64x64xf32>
    %24 = arith.negf %23 : vector<64x64xf32>
    %25 = math.exp %24 : vector<64x64xf32>
    %cst_14 = arith.constant 1.000000e+00 : f32
    %26 = vector.broadcast %cst_14 : f32 to vector<64x64xf32>
    %27 = arith.addf %26, %25 : vector<64x64xf32>
    %28 = arith.divf %26, %27 : vector<64x64xf32>
    %29 = arith.addf %8, %18 : vector<64x64xf32>
    %30 = arith.addf %29, %28 : vector<64x64xf32>
    %cst_15 = arith.constant 0.000000e+00 : f32
    %31 = vector.broadcast %cst_15 : f32 to vector<64x64xf32>
    %32 = arith.maximumf %30, %31 : vector<64x64xf32>
    %33 = arith.truncf %32 : vector<64x64xf32> to vector<64x64xbf16>
    %c0_16 = arith.constant 0 : index
    %c0_17 = arith.constant 0 : index
    %34 = vector.load %arg7[%c0_16, %c0_17] : memref<64x128xbf16, #tpu.memory_space<vmem>>, vector<64x128xbf16>
    %cst_18 = arith.constant dense<0.000000e+00> : vector<64x128xf32>
    %35 = tpu.matmul %33, %34, %cst_18 {dimension_numbers = #tpu.dot_dimension_numbers<[1], [0], [0], [1], [0, 0, 1, 1], [], []>} : vector<64x64xbf16>, vector<64x128xbf16>, vector<64x128xf32> -> vector<64x128xf32>
    %c0_19 = arith.constant 0 : index
    %c0_20 = arith.constant 0 : index
    %36 = vector.load %arg8[%c0_19, %c0_20] : memref<1x128xf32, #tpu.memory_space<vmem>>, vector<1x128xf32>
    %37 = vector.broadcast %36 : vector<1x128xf32> to vector<64x128xf32>
    %38 = arith.addf %35, %37 : vector<64x128xf32>
    %c0_21 = arith.constant 0 : index
    %c0_22 = arith.constant 0 : index
    %39 = vector.load %arg9[%c0_21, %c0_22] : memref<64x128xf32, #tpu.memory_space<vmem>>, vector<64x128xf32>
    tpu.vector_store %arg9[%c0_21, %c0_22], %38 {strides = array<i32>} : memref<64x128xf32, #tpu.memory_space<vmem>>, vector<64x128xf32>,
    return
  }
  func.func @transform_0(%arg0: i32) -> (i32, i32) {
    %c0_i32 = arith.constant 0 : i32
    %c0_i32_0 = arith.constant 0 : i32
    return %arg0, %c0_i32 : i32, i32
  }
  func.func @transform_1(%arg0: i32) -> (i32, i32) {
    %c0_i32 = arith.constant 0 : i32
    %c0_i32_0 = arith.constant 0 : i32
    %c0_i32_1 = arith.constant 0 : i32
    return %c0_i32, %c0_i32_0 : i32, i32
  }
  func.func @transform_2(%arg0: i32) -> (i32, i32) {
    %c0_i32 = arith.constant 0 : i32
    %c0_i32_0 = arith.constant 0 : i32
    %c0_i32_1 = arith.constant 0 : i32
    return %c0_i32, %c0_i32_0 : i32, i32
  }
  func.func @transform_3(%arg0: i32) -> (i32, i32) {
    %c0_i32 = arith.constant 0 : i32
    %c0_i32_0 = arith.constant 0 : i32
    %c0_i32_1 = arith.constant 0 : i32
    return %c0_i32, %c0_i32_0 : i32, i32
  }
  func.func @transform_4(%arg0: i32) -> (i32, i32) {
    %c0_i32 = arith.constant 0 : i32
    %c0_i32_0 = arith.constant 0 : i32
    %c0_i32_1 = arith.constant 0 : i32
    return %c0_i32, %c0_i32_0 : i32, i32
  }
  func.func @transform_5(%arg0: i32) -> (i32, i32) {
    %c0_i32 = arith.constant 0 : i32
    %c0_i32_0 = arith.constant 0 : i32
    %c0_i32_1 = arith.constant 0 : i32
    return %c0_i32, %c0_i32_0 : i32, i32
  }
  func.func @transform_6(%arg0: i32) -> (i32, i32) {
    %c0_i32 = arith.constant 0 : i32
    %c0_i32_0 = arith.constant 0 : i32
    %c0_i32_1 = arith.constant 0 : i32
    return %c0_i32, %c0_i32_0 : i32, i32
  }
  func.func @transform_7(%arg0: i32) -> (i32, i32) {
    %c0_i32 = arith.constant 0 : i32
    %c0_i32_0 = arith.constant 0 : i32
    %c0_i32_1 = arith.constant 0 : i32
    return %c0_i32, %c0_i32_0 : i32, i32
  }
  func.func @transform_8(%arg0: i32) -> (i32, i32) {
    %c0_i32 = arith.constant 0 : i32
    %c0_i32_0 = arith.constant 0 : i32
    return %arg0, %c0_i32 : i32, i32
  }
}

</mosaic_0001>

<bundles_post_ra>
// kernel: tpu_custom_call.1
= control target key start
LH: loop header
LB: loop body
LE: loop exit
PB: predicated region body
PF: predicated region fallthrough
CT: control target
= control target key end

     0   :  { %s2186_s0 = inlined_call_operand.hbm [shape: bf16[128,128], index: 0, kind: input, shape index: {}]   ;;  %s2187_s1 = inlined_call_operand.hbm [shape: bf16[128,128], index: 1, kind: input, shape index: {}]   ;;  %s2188_s2 = inlined_call_operand.vmem [shape: f32[1,128], index: 2, kind: input, shape index: {}]   ;;  %s2189_s3 = inlined_call_operand.hbm [shape: bf16[64,128], index: 3, kind: input, shape index: {}]   ;;  %s2190_s4 = inlined_call_operand.vmem [shape: f32[1,128], index: 4, kind: input, shape index: {}]   ;;  %s2191_s5 = inlined_call_operand.hbm [shape: bf16[64,64], index: 5, kind: input, shape index: {}]   ;;  %s2192_s6 = inlined_call_operand.hbm [shape: bf16[64,128], index: 6, kind: input, shape index: {}]   ;;  %s2193_s7 = inlined_call_operand.vmem [shape: f32[1,128], index: 7, kind: input, shape index: {}]   ;;  %s2194_s8 = inlined_call_operand.hbm [shape: f32[128,128], index: 8, kind: output, shape index: {}]  }
   0x1   :  { %2197 = sst [smem:[#allocation16_spill]] %s2187_s1 }
   0x2   :  { %2198 = sst [smem:[#allocation17_spill]] %s2189_s3 }
   0x3   :  { %13 = vsyncpa [#allocation3], 0 }
   0x4   :  { %15 = vsyncpa [#allocation3 + $0x1], 0 }
   0x5   :  { %16 = vsyncpa [#allocation6], 0 }
   0x6   :  { %17 = vsyncpa [#allocation9], 0 }
   0x7   :  { %18 = vsyncpa [#allocation4], 0 }
   0x8   :  { %20 = vsyncpa [#allocation4 + $0x1], 0  ;;  %s1834_s27 = smov 0   ;;  %s1836_s28 = smov 0  }
   0x9   :  { %s1838_s29 = smov 0   ;;  %s1840_s30 = smov 0  }
   0xa LB: > { %s1855_s9 = sadd.s32 4294967295, %s1778_s30   ;;  %s1247_s10 = sadd.s32 4294967294, %s1778_s30   ;;  %s1778_s30 = sphi %s1840_s30, %s2213_s30   ;;  %s1774_s29 = sphi %s1838_s29, %s2212_s29   ;;  %s1770_s28 = sphi %s1836_s28, %s2211_s28   ;;  %s1766_s27 = sphi %s1834_s27, %s2210_s27  }
   0xb   : > { %p46_p0 = scmp.ne.s32.totalorder %s1770_s28, %s1766_s27  ;;  %p47_p1 = scmp.eq.s32.totalorder %s1855_s9, 0 }
   0xc   : > { %p217_p2 = scmp.eq.s32.totalorder %s1855_s9, 1  ;;  %p223_p3 = scmp.eq.s32.totalorder %s1247_s10, 1 }
   0xd   : > { %p1864_p4 = por %p47_p1, %p46_p0  ;;  %p1248_p5 = scmp.ge.s32.totalorder %s1778_s30, 1 }
   0xe   : > { %p1869_p6 = por %p223_p3, %p46_p0  ;;  %p230_p7 = scmp.lt.s32.totalorder %s1778_s30, 3 }
   0xf   : > { %s2201_s1 = sld [smem:[#allocation16_spill]]  ;;  %s1780_s17 = smov [#allocation5]  }
  0x10   : > { %p1877_p8 = pnand %p1248_p5, %p230_p7  ;;  %s243_s18 = sshll.u32 %s1780_s17, 4  ;;  %s244_s18 = int_to_ptr.vmem [resolvable:$true] %s243_s18 }
  0x11   : > { %s275_s22 = sshll.u32 %s2191_s5, 4  ;;  %s2195_s23 = smov 64   ;;  %s276_s22 = int_to_ptr.hbm [resolvable:$true] %s275_s22 }
  0x12   : > { %p1431_p9 = pneg %p1877_p8  ;;  %s2196_s24 = smov 4  }
  0x13   : > { %s1783_s25 = smov [#allocation8]   ;;  %s2204_s3 = sld [smem:[#allocation17_spill]] }
  0x14   : > { %p1885_p10 = pnand %p1431_p9, %p47_p1  ;;  %s277_s26 = sshll.u32 %s1783_s25, 4  ;;  %s278_s26 = int_to_ptr.vmem [resolvable:$true] %s277_s26 }
  0x15   : > { %s241_s15 = sshll.u32 %s2201_s1, 4  ;;  %s1784_s20 = smov [#allocation7]   ;;  %s242_s15 = int_to_ptr.hbm [resolvable:$true] %s241_s15 }
  0x16   : > { %1434 = dma.hbm_to_vmem [thread:$0]  (!%p1885_p10), %s242_s15, 1024, %s244_s18, [#allocation6], %s2195_s23, %s2195_s23, %s2196_s24  }
  0x17   : > { %1440 = dma.hbm_to_vmem [thread:$0]  (!%p1885_p10), %s276_s22, 512, %s278_s26, [#allocation9], %s2195_s23, %s2195_s23, %s2196_s24  }
  0x18   : > { %s289_s18 = sshll.u32 %s2192_s6, 4  ;;  %s260_s21 = sshll.u32 %s1784_s20, 4  ;;  %s290_s18 = int_to_ptr.hbm [resolvable:$true] %s289_s18  ;;  %s261_s21 = int_to_ptr.vmem [resolvable:$true] %s260_s21 }
  0x19   : > { %s258_s14 = sshll.u32 %s2204_s3, 4  ;;  %s1785_s25 = smov [#allocation10]   ;;  %s259_s14 = int_to_ptr.hbm [resolvable:$true] %s258_s14 }
  0x1a   : > { %1437 = dma.hbm_to_vmem [thread:$0]  (!%p1885_p10), %s259_s14, 512, %s261_s21, [#allocation6], %s2195_s23, %s2195_s23, %s2196_s24  }
  0x1b   : > { %s291_s22 = sshll.u32 %s1785_s25, 4  ;;  %s1920_s26 = sadd.s32 1, %s1778_s30   ;;  %s292_s22 = int_to_ptr.vmem [resolvable:$true] %s291_s22 }
  0x1c   : > { %1443 = dma.hbm_to_vmem [thread:$0]  (!%p1885_p10), %s290_s18, 512, %s292_s22, [#allocation9], %s2195_s23, %s2195_s23, %s2196_s24  }
  0x1d   : > { %s33_s10 = sadd.s32 1, %s1774_s29  ;;  %s30_s13 = ssub.s32 %s1778_s30, %s1920_s26 }
  0x1e   : > { %p40_p12 = scmp.ne.s32.totalorder %s1774_s29, %s1770_s28  ;;  %p31_p13 = scmp.eq.s32.totalorder %s30_s13, 0 }
  0x1f   : > { %p41_p0 = scmp.eq.s32.totalorder %s1778_s30, 0  ;;  %p1456_p5 = scmp.lt.s32.totalorder %s1778_s30, 2 }
  0x20   : > { %p1930_p3 = por %p217_p2, %p40_p12  ;;  %s308_s19 = sand.u32 1, %s1774_s29  }
  0x21   : > { %s1936_s15 = scalar_select %p31_p13, %s1774_s29, %s33_s10  }
  0x22   : > { %p42_p7 = por %p41_p0, %p40_p12  ;;  %s1254_s17 = sshll.u32 %s308_s19, 5 }
  0x23   : > { %s1385_s18 = sshll.u32 %s1778_s30, 5  ;;  %s312_s22 = scalar_lea.vmem [#allocation2], %s1254_s17 }
  0x24   : > { %s317_s25 = scalar_lea.hbm %s2186_s0, %s1385_s18  ;;  %s320_s23 = sshll.u32 %s312_s22, 4  ;;  %s321_s23 = int_to_ptr.vmem [resolvable:$true] %s320_s23 }
  0x25   : > { %s318_s13 = sshll.u32 %s317_s25, 4  ;;  %p1943_p2 = pnand %p1456_p5, %p42_p7  ;;  %s319_s13 = int_to_ptr.hbm [resolvable:$true] %s318_s13 }
  0x26   : > { %s309_s10 = scalar_lea.sflag [#allocation3], %s308_s19  ;;  %s1674_s1 = sshra.s32 %s319_s13, 4  ;;  %s1675_s1 = int_to_ptr.hbm [resolvable:$true] %s1674_s1 }
  0x27   : > { %s1676_s3 = scalar_lea.hbm %s1675_s1, 32  ;;  %p1678_p10 = pneg %p1943_p2 }
  0x28   : > { %p1677_p9 = scmp.ne.s32.totalorder %s1675_s1, %s1676_s3  ;;  %s1681_s20 = scalar_lea.hbm %s2186_s0, 64 }
  0x29   : > { %p1682_p0 = scmp.lt.s32.totalorder %s1675_s1, %s2186_s0  ;;  %p1683_p5 = scmp.lt.s32.totalorder %s1681_s20, %s1676_s3 }
  0x2a   : > { %p1679_p12 = pnand %p1678_p10, %p1677_p9 }
  0x2b   : > { %p1684_p7 = por %p1683_p5, %p1682_p0 }
  0x2c   : > { %p1680_p13 = pneg %p1679_p12 }
  0x2e   : > { %p1685_p11 = pnand %p1684_p7, %p1680_p13 }
  0x30   : > { %1688 = shalt.err (!%p1685_p11)
}
  0x31   : > { %s2207_s19 = smov 4   ;;  %s2208_s22 = smov 64  }
  0x32   : > { %1447 = dma.hbm_to_vmem [thread:$0]  (!%p1943_p2), %s319_s13, 512, %s321_s23, %s309_s10, %s2208_s22, %s2208_s22, %s2207_s19  }
  0x33   : > { %332 = sbr.rel (%p1877_p8) target bundleno = 1210 (0x4ba), region = 52  ;;  %s1963_s18 = sand.u32 (!%p1877_p8), 1, %s1770_s28  }
  0x34   : > { %s1258_s1 = sshll.u32 (!%p1877_p8), %s1963_s18, 5  ;;  %s335_s3 = scalar_lea.sflag (!%p1877_p8), [#allocation3], %s1963_s18 }
  0x35   : > { %s338_s17 = scalar_lea.vmem (!%p1877_p8), [#allocation2], %s1258_s1 }
  0x38   : > { %1749 = dma.done.wait (%p1864_p4), %s335_s3, 512  }
  0x39   : > { %1751 = vsyncadd (%p1864_p4), %s335_s3, 4294966784 }
  0x3a   : > { %1753 = dma.done.wait (%p47_p1), [#allocation6], 1536  }
  0x3b   : > { %1755 = vsyncadd (%p47_p1), [#allocation6], 4294965760 }
  0x3c   : > { %1757 = dma.done.wait (%p47_p1), [#allocation9], 1024  }
  0x3d   : > { %1759 = vsyncadd (%p47_p1), [#allocation9], 4294966272  ;;  %v1397_v0 = vld [vmem:[#allocation5 + $0x38] sm:$0xff]  ;;  %v1396_v1 = vld [vmem:[#allocation5 + $0x30] sm:$0xff]  ;;  %vm572_vm0 = vcmask 523264   ;;  %s1786_s13 = smov 64  }
  0x3e   : > { %495 = vmatpush.bf16.msra.mxu0 %v1397_v0  ;;  %v1395_v2 = vld [vmem:[#allocation5 + $0x28] sm:$0xff]  ;;  %v1394_v3 = vld [vmem:[#allocation5 + $0x20] sm:$0xff]  ;;  %v1393_v4 = vld [vmem:[#allocation5 + $0x18] sm:$0xff]  ;;  %s1263_s10 = sshll.u32 %s1963_s18, 6  ;;  %s1410_s19 = sshll.u32 %s1855_s9, 6 }
  0x3f   : > { %v1392_v5 = vld [vmem:[#allocation5 + $0x10] sm:$0xff]  ;;  %v1391_v6 = vld [vmem:[#allocation5 + $0x8] sm:$0xff]  ;;  %v1390_v7 = vld [vmem:[#allocation5] sm:$0xff]  ;;  %s391_s25 = scalar_lea.vmem [#allocation11], %s1263_s10  ;;  %s1132_s3 = scalar_lea.hbm %s2194_s8, %s1410_s19 }
  0x40   : > { %v1386_v8 = vld [vmem:[%s338_s17] sm:$0xff]  ;;  %v1387_v9 = vld [vmem:[%s338_s17 + $0x8] sm:$0xff]  ;;  %v1388_v10 = vld [vmem:[%s338_s17 + $0x10] sm:$0xff]  ;;  %s1135_s11 = sshll.u32 %s1132_s3, 4  ;;  %s1121_s16 = scalar_lea.sflag [#allocation4], %s1963_s18  ;;  %s1136_s11 = int_to_ptr.hbm [resolvable:$true] %s1135_s11 }
  0x41   : > { %v1389_v11 = vld [vmem:[%s338_s17 + $0x18] sm:$0xff]  ;;  %v1400_v13 = vld [vmem:[#allocation7 + $0x10] sm:$0xff]  ;;  %v1399_v14 = vld [vmem:[#allocation7 + $0x8] sm:$0xff]  ;;  %s1133_s17 = sshll.u32 %s391_s25, 4  ;;  %s1718_s23 = sshra.s32 %s1136_s11, 4  ;;  %s1134_s17 = int_to_ptr.vmem [resolvable:$true] %s1133_s17  ;;  %s1719_s23 = int_to_ptr.hbm [resolvable:$true] %s1718_s23 }
  0x42   : > { %496 = vmatpush.bf16.msra.mxu0 %v1396_v1  ;;  %v1401_v12 = vld [vmem:[#allocation7 + $0x18] sm:$0xff]  ;;  %v1398_v15 = vld [vmem:[#allocation7] sm:$0xff]  ;;  %s1720_s24 = scalar_lea.hbm %s1719_s23, 64  ;;  %s1724_s10 = scalar_lea.hbm %s2194_s8, 128 }
  0x43   : > { %589 = vmatpush.bf16.msra.mxu1 %v1401_v12  ;;  %v1503_v17 = vld [vmem:[%s2188_s2] ss:$0 sm:$0xff]  ;;  %p1721_p1 = scmp.ne.s32.totalorder %s1719_s23, %s1720_s24  ;;  %p1725_p11 = scmp.lt.s32.totalorder %s1719_s23, %s2194_s8 }
  0x44   : > { %v1504_v45 = vld [vmem:[%s2190_s4] ss:$0 sm:$0xff]  ;;  %p1726_p2 = scmp.lt.s32.totalorder %s1724_s10, %s1720_s24 }
  0x45   : > { %p1722_p4 = pnand %p1721_p1, %p1930_p3 }
  0x46   : > { %497 = vmatpush.bf16.msra.mxu0 %v1395_v2  ;;  %p1727_p9 = por %p1726_p2, %p1725_p11 }
  0x47   : > { %590 = vmatpush.bf16.msra.mxu1 %v1400_v13  ;;  %p1723_p8 = pneg %p1722_p4 }
  0x49   : > { %p1728_p10 = pnand %p1727_p9, %p1723_p8 }
  0x4a   : > { %498 = vmatpush.bf16.msra.mxu0 %v1394_v3 }
  0x4b   : > { %591 = vmatpush.bf16.msra.mxu1 %v1399_v14 }
  0x4e   : > { %499 = vmatpush.bf16.msra.mxu0 %v1393_v4 }
  0x4f   : > { %592 = vmatpush.bf16.msra.mxu1 %v1398_v15 }
  0x52   : > { %500 = vmatpush.bf16.msra.mxu0 %v1392_v5 }
  0x56   : > { %501 = vmatpush.bf16.msra.mxu0 %v1391_v6 }
  0x5a   : > { %502 = vmatpush.bf16.msra.mxu0 %v1390_v7 }
  0x5d   : > { %503 = vmatmul.bf16.vlgmr.msra.gmra.mxu0 %v1386_v8 }
  0x6d   : > { %508 = vmatmul.bf16.gmra.mxu0 %v1387_v9 }
  0x7d   : > { %513 = vmatmul.bf16.gmra.mxu0 %v1388_v10 }
  0x8d   : > { %518 = vmatmul.bf16.gmra.mxu0 %v1389_v11 }
  0xda   : > { %v504_v16 = vpop.f32.mrf.mxu0 }
  0xdb   : > { %v1982_v18 = vadd.f32 %v1503_v17, %v504_v16 }
  0xdd   : > { %v524_v21 = vmax.f32 %v1982_v18, 0.0 }
  0xe2   : > { %v506_v19 = vpop.f32.mrf.mxu0 }
  0xe3   : > { %v1984_v20 = vadd.f32 %v1503_v17, %v506_v19 }
  0xe5   : > { %v525_v22 = vmax.f32 %v1984_v20, 0.0 }
  0xe7   : > { %v532_v23 = vpack.c.bf16 %v525_v22, %v524_v21 }
  0xe9   : > { %1328 = vmatmul.msk.bf16.vlgmr.msra.gmra.mxu1 %vm572_vm0, %v532_v23  ;;  %v1405_v23 = vld [vmem:[#allocation8 + $0x18] sm:$0xff] }
  0xea   : > { %v509_v24 = vpop.f32.mrf.mxu0  ;;  %726 = vmatpush.bf16.msra.mxu2 %v1405_v23 }
  0xeb   : > { %v1993_v25 = vadd.f32 %v1503_v17, %v509_v24  ;;  %v1404_v24 = vld [vmem:[#allocation8 + $0x10] sm:$0xff] }
  0xed   : > { %v526_v28 = vmax.f32 %v1993_v25, 0.0 }
  0xee   : > { %727 = vmatpush.bf16.msra.mxu2 %v1404_v24 }
  0xf2   : > { %v511_v26 = vpop.f32.mrf.mxu0 }
  0xf3   : > { %v1995_v27 = vadd.f32 %v1503_v17, %v511_v26  ;;  %v1403_v26 = vld [vmem:[#allocation8 + $0x8] sm:$0xff] }
  0xf4   : > { %728 = vmatpush.bf16.msra.mxu2 %v1403_v26 }
  0xf5   : > { %v527_v29 = vmax.f32 %v1995_v27, 0.0 }
  0xf7   : > { %v533_v30 = vpack.c.bf16 %v527_v29, %v526_v28 }
  0xf9   : > { %1329 = vmatmul.msk.bf16.gmra.mxu1 %vm572_vm0, %v533_v30  ;;  %v1402_v30 = vld [vmem:[#allocation8] sm:$0xff] }
  0xfa   : > { %v514_v31 = vpop.f32.mrf.mxu0  ;;  %729 = vmatpush.bf16.msra.mxu2 %v1402_v30 }
  0xfb   : > { %v2004_v32 = vadd.f32 %v1503_v17, %v514_v31 }
  0xfd   : > { %v528_v34 = vmax.f32 %v2004_v32, 0.0 }
 0x102   : > { %v516_v33 = vpop.f32.mrf.mxu0 }
 0x103   : > { %v2007_v35 = vadd.f32 %v1503_v17, %v516_v33 }
 0x105   : > { %v529_v36 = vmax.f32 %v2007_v35, 0.0 }
 0x107   : > { %v534_v37 = vpack.c.bf16 %v529_v36, %v528_v34 }
 0x109   : > { %1330 = vmatmul.msk.bf16.gmra.mxu1 %vm572_vm0, %v534_v37 }
 0x10a   : > { %v519_v38 = vpop.f32.mrf.mxu0 }
 0x10b   : > { %v2015_v39 = vadd.f32 %v1503_v17, %v519_v38 }
 0x10d   : > { %v530_v41 = vmax.f32 %v2015_v39, 0.0 }
 0x112   : > { %v521_v40 = vpop.f32.mrf.mxu0 }
 0x113   : > { %v2018_v42 = vadd.f32 %v1503_v17, %v521_v40 }
 0x115   : > { %v531_v43 = vmax.f32 %v2018_v42, 0.0 }
 0x117   : > { %v535_v44 = vpack.c.bf16 %v531_v43, %v530_v41 }
 0x119   : > { %1331 = vmatmul.msk.bf16.gmra.mxu1 %vm572_vm0, %v535_v44 }
 0x166   : > { %v594_v46 = vpop.f32.mrf.mxu1 }
 0x167   : > { %v2029_v47 = vadd.f32 %v1504_v45, %v594_v46 }
 0x169   : > { %622 = vrot.lane.b32.xlu0 %v2029_v47, %s1786_s13 }
 0x16e   : > { %v596_v48 = vpop.f32.mrf.mxu1 }
 0x16f   : > { %v2033_v49 = vadd.f32 %v1504_v45, %v596_v48 }
 0x171   : > { %624 = vrot.lane.b32.xlu0 %v2033_v49, %s1786_s13 }
 0x176   : > { %v599_v50 = vpop.f32.mrf.mxu1 }
 0x177   : > { %v2037_v51 = vadd.f32 %v1504_v45, %v599_v50 }
 0x179   : > { %626 = vrot.lane.b32.xlu1 %v2037_v51, %s1786_s13 }
 0x17e   : > { %v601_v52 = vpop.f32.mrf.mxu1 }
 0x17f   : > { %v2041_v53 = vadd.f32 %v1504_v45, %v601_v52 }
 0x181   : > { %628 = vrot.lane.b32.xlu1 %v2041_v53, %s1786_s13 }
 0x186   : > { %v604_v54 = vpop.f32.mrf.mxu1 }
 0x187   : > { %v2045_v55 = vadd.f32 %v1504_v45, %v604_v54 }
 0x189   : > { %630 = vrot.lane.b32.xlu2 %v2045_v55, %s1786_s13 }
 0x18e   : > { %v606_v56 = vpop.f32.mrf.mxu1 }
 0x18f   : > { %v2049_v57 = vadd.f32 %v1504_v45, %v606_v56 }
 0x191   : > { %632 = vrot.lane.b32.xlu2 %v2049_v57, %s1786_s13 }
 0x196   : > { %v609_v58 = vpop.f32.mrf.mxu1 }
 0x197   : > { %v2053_v59 = vadd.f32 %v1504_v45, %v609_v58 }
 0x199   : > { %634 = vrot.lane.b32.xlu0 %v2053_v59, %s1786_s13 }
 0x19e   : > { %v611_v60 = vpop.f32.mrf.mxu1 }
 0x19f   : > { %v2057_v61 = vadd.f32 %v1504_v45, %v611_v60 }
 0x1a1   : > { %636 = vrot.lane.b32.xlu1 %v2057_v61, %s1786_s13 }
 0x1db   : > { %v623_v62 = vpop.permute.xlu0 %622 }
 0x1dc   : > { %v646_v63 = vadd.f32 %v623_v62, %v1982_v18 }
 0x1de   : > { %1506 = vtanh.f32 %v646_v63 }
 0x1e3   : > { %v631_v0 = vpop.permute.xlu2 %630  ;;  %v625_v1 = vpop.permute.xlu0 %624 }
 0x1e4   : > { %v647_v2 = vadd.f32 %v625_v1, %v1984_v20  ;;  %v650_v3 = vadd.f32 %v631_v0, %v2004_v32  ;;  %v1507_v6 = vpop.eup %1506 }
 0x1e6   : > { %1508 = vtanh.f32 %v647_v2 }
 0x1e7   : > { %1510 = vtanh.f32 %v650_v3 }
 0x1eb   : > { %v633_v4 = vpop.permute.xlu2 %632  ;;  %v627_v5 = vpop.permute.xlu1 %626 }
 0x1ec   : > { %v651_v7 = vadd.f32 %v633_v4, %v2007_v35  ;;  %v1509_v8 = vpop.eup %1508  ;;  %v648_v10 = vadd.f32 %v627_v5, %v1993_v25 }
 0x1ed   : > { %v662_v9 = vpack.c.bf16 %v1509_v8, %v1507_v6  ;;  %v2067_v11 = vpop.eup %1510 }
 0x1ee   : > { %1512 = vtanh.f32 %v651_v7 }
 0x1ef   : > { %678 = vrot.lane.b32.xlu2 %v662_v9, %s1786_s13  ;;  %1514 = vtanh.f32 %v648_v10 }
 0x1f3   : > { %v629_v12 = vpop.permute.xlu1 %628 }
 0x1f4   : > { %v2069_v13 = vpop.eup %1512  ;;  %v649_v14 = vadd.f32 %v629_v12, %v1995_v27 }
 0x1f5   : > { %v664_v15 = vpack.c.bf16 %v2069_v13, %v2067_v11  ;;  %v1515_v16 = vpop.eup %1514 }
 0x1f6   : > { %1516 = vtanh.f32 %v649_v14 }
 0x1f7   : > { %682 = vrot.lane.b32.xlu1 %v664_v15, %s1786_s13 }
 0x1fc   : > { %v2075_v17 = vpop.eup %1516 }
 0x1fd   : > { %v663_v19 = vpack.c.bf16 %v2075_v17, %v1515_v16 }
 0x1ff   : > { %680 = vrot.lane.b32.xlu0 %v663_v19, %s1786_s13 }
 0x20b   : > { %v635_v31 = vpop.permute.xlu0 %634 }
 0x20c   : > { %v652_v33 = vadd.f32 %v635_v31, %v2015_v39 }
 0x20e   : > { %1518 = vtanh.f32 %v652_v33 }
 0x213   : > { %v637_v37 = vpop.permute.xlu1 %636 }
 0x214   : > { %v653_v38 = vadd.f32 %v637_v37, %v2018_v42  ;;  %v2081_v40 = vpop.eup %1518 }
 0x216   : > { %1520 = vtanh.f32 %v653_v38 }
 0x21c   : > { %v2083_v44 = vpop.eup %1520 }
 0x21d   : > { %v665_v45 = vpack.c.bf16 %v2083_v44, %v2081_v40 }
 0x21f   : > { %684 = vrot.lane.b32.xlu2 %v665_v45, %s1786_s13 }
 0x249   : > { %v679_v46 = vpop.permute.xlu2 %678 }
 0x24a   : > { %1348 = vmatmul.msk.bf16.vlgmr.msra.gmra.mxu2 %vm572_vm0, %v679_v46 }
 0x269   : > { %v683_v50 = vpop.permute.xlu1 %682 }
 0x271   : > { %v681_v48 = vpop.permute.xlu0 %680 }
 0x272   : > { %1349 = vmatmul.msk.bf16.gmra.mxu2 %vm572_vm0, %v681_v48 }
 0x279   : > { %v685_v52 = vpop.permute.xlu2 %684 }
 0x282   : > { %1350 = vmatmul.msk.bf16.gmra.mxu2 %vm572_vm0, %v683_v50 }
 0x292   : > { %1351 = vmatmul.msk.bf16.gmra.mxu2 %vm572_vm0, %v685_v52 }
 0x2cd   : > { %v731_v54 = vpop.f32.mrf.mxu2 }
 0x2ce   : > { %759 = vrot.lane.b32.xlu0 %v731_v54, %s1786_s13 }
 0x2d5   : > { %v733_v56 = vpop.f32.mrf.mxu2 }
 0x2d6   : > { %761 = vrot.lane.b32.xlu1 %v733_v56, %s1786_s13 }
 0x2f5   : > { %v736_v58 = vpop.f32.mrf.mxu2 }
 0x2f6   : > { %763 = vrot.lane.b32.xlu2 %v736_v58, %s1786_s13 }
 0x2fd   : > { %v738_v60 = vpop.f32.mrf.mxu2 }
 0x2fe   : > { %765 = vrot.lane.b32.xlu0 %v738_v60, %s1786_s13 }
 0x305   : > { %v741_v62 = vpop.f32.mrf.mxu2 }
 0x306   : > { %767 = vrot.lane.b32.xlu1 %v741_v62, %s1786_s13 }
 0x30d   : > { %v743_v63 = vpop.f32.mrf.mxu2 }
 0x30e   : > { %769 = vrot.lane.b32.xlu2 %v743_v63, %s1786_s13 }
 0x315   : > { %v746_v0 = vpop.f32.mrf.mxu2 }
 0x316   : > { %951 = vrot.lane.b32.xlu2 %v1507_v6, %s1786_s13  ;;  %771 = vrot.lane.b32.xlu0 %v746_v0, %s1786_s13 }
 0x31d   : > { %v748_v1 = vpop.f32.mrf.mxu2 }
 0x31e   : > { %953 = vrot.lane.b32.xlu0 %v1509_v8, %s1786_s13  ;;  %773 = vrot.lane.b32.xlu1 %v748_v1, %s1786_s13 }
 0x326   : > { %955 = vrot.lane.b32.xlu0 %v1515_v16, %s1786_s13 }
 0x340   : > { %v760_v2 = vpop.permute.xlu0 %759 }
 0x341   : > { %v783_v3 = vadd.f32 %v760_v2, %v2029_v47 }
 0x343   : > { %v1352_v4 = vmul.f32 -1.442695, %v783_v3 }
 0x345   : > { %1522 = vpow2.f32 %v1352_v4 }
 0x348   : > { %v762_v5 = vpop.permute.xlu1 %761 }
 0x349   : > { %v784_v7 = vadd.f32 %v762_v5, %v2033_v49 }
 0x34b   : > { %v1523_v9 = vpop.eup %1522  ;;  %v1353_v10 = vmul.f32 -1.442695, %v784_v7 }
 0x34c   : > { %v815_v6 = vadd.f32 1.0, %v1523_v9 }
 0x34d   : > { %1524 = vpow2.f32 %v1353_v10 }
 0x34e   : > { %1526 = vrcp.f32 %v815_v6  ;;  %v834_v24 = vand.u32 2147483648, %v815_v6  ;;  %v832_v49 = vand.u32 2147483647, %v815_v6  ;;  %vm828_vm2 = vweird.f32 %v815_v6 }
 0x350   : > { %v764_v12 = vpop.permute.xlu2 %763  ;;  %v835_v38 = vor.u32 1.1754944e-38, %v834_v24  ;;  %vm833_vm4 = vcmp.eq.f32.partialorder %v832_v49, 8.507059e+37 }
 0x351   : > { %v785_v8 = vadd.f32 %v764_v12, %v2037_v51 }
 0x353   : > { %v1354_v14 = vmul.f32 -1.442695, %v785_v8  ;;  %v1525_v15 = vpop.eup %1524 }
 0x354   : > { %v1527_v19 = vpop.eup %1526  ;;  %v816_v16 = vadd.f32 1.0, %v1525_v15 }
 0x355   : > { %1528 = vpow2.f32 %v1354_v14  ;;  %v824_v23 = vmul.f32 %v1527_v19, %v815_v6  ;;  %vm829_vm1 = vweird.f32 %v1527_v19 }
 0x356   : > { %1530 = vrcp.f32 %v816_v16  ;;  %vm830_vm3 = vmor %vm828_vm2, %vm829_vm1  ;;  %v849_v50 = vand.u32 2147483648, %v816_v16  ;;  %v847_v54 = vand.u32 2147483647, %v816_v16  ;;  %vm843_vm6 = vweird.f32 %v816_v16 }
 0x357   : > { %v825_v47 = vsub.f32 1.0, %v824_v23 }
 0x358   : > { %v850_v60 = vor.u32 1.1754944e-38, %v849_v50  ;;  %vm848_vm8 = vcmp.eq.f32.partialorder %v847_v54, 8.507059e+37 }
 0x359   : > { %v826_v26 = vmul.f32 %v1527_v19, %v825_v47 }
 0x35b   : > { %v1529_v30 = vpop.eup %1528  ;;  %v827_v33 = vadd.f32 %v1527_v19, %v826_v26 }
 0x35c   : > { %v817_v31 = vadd.f32 1.0, %v1529_v30  ;;  %v1531_v37 = vpop.eup %1530 }
 0x35d   : > { %v831_v51 = vsel %vm830_vm3, %v1527_v19, %v827_v33  ;;  %v839_v45 = vmul.f32 %v1531_v37, %v816_v16  ;;  %vm844_vm5 = vweird.f32 %v1531_v37 }
 0x35e   : > { %1532 = vrcp.f32 %v817_v31  ;;  %v836_v46 = vsel %vm833_vm4, %v835_v38, %v831_v51  ;;  %vm845_vm7 = vmor %vm843_vm6, %vm844_vm5  ;;  %v864_v3 = vand.u32 2147483648, %v817_v31  ;;  %v862_v7 = vand.u32 2147483647, %v817_v31 }
 0x35f   : > { %991 = vrot.lane.b32.xlu1 %v836_v46, %s1786_s13  ;;  %v840_v48 = vsub.f32 1.0, %v839_v45  ;;  %vm858_vm10 = vweird.f32 %v817_v31 }
 0x360   : > { %v865_v6 = vor.u32 1.1754944e-38, %v864_v3  ;;  %vm863_vm12 = vcmp.eq.f32.partialorder %v862_v7, 8.507059e+37 }
 0x361   : > { %v841_v52 = vmul.f32 %v1531_v37, %v840_v48 }
 0x363   : > { %v842_v58 = vadd.f32 %v1531_v37, %v841_v52 }
 0x364   : > { %v1533_v56 = vpop.eup %1532 }
 0x365   : > { %v854_v62 = vmul.f32 %v1533_v56, %v817_v31  ;;  %v846_v63 = vsel %vm845_vm7, %v1531_v37, %v842_v58  ;;  %vm859_vm9 = vweird.f32 %v1533_v56 }
 0x366   : > { %v851_v0 = vsel %vm848_vm8, %v850_v60, %v846_v63  ;;  %vm860_vm11 = vmor %vm858_vm10, %vm859_vm9 }
 0x367   : > { %v855_v1 = vsub.f32 1.0, %v854_v62  ;;  %993 = vrot.lane.b32.xlu2 %v851_v0, %s1786_s13  ;;  %957 = vrot.lane.b32.xlu1 %v2075_v17, %s1786_s13 }
 0x368   : > { %v770_v2 = vpop.permute.xlu2 %769 }
 0x369   : > { %v788_v4 = vadd.f32 %v770_v2, %v2049_v57  ;;  %v856_v5 = vmul.f32 %v1533_v56, %v855_v1 }
 0x36b   : > { %v1357_v9 = vmul.f32 -1.442695, %v788_v4  ;;  %v857_v10 = vadd.f32 %v1533_v56, %v856_v5 }
 0x36d   : > { %1534 = vpow2.f32 %v1357_v9  ;;  %v861_v12 = vsel %vm860_vm11, %v1533_v56, %v857_v10 }
 0x36e   : > { %v866_v8 = vsel %vm863_vm12, %v865_v6, %v861_v12 }
 0x36f   : > { %995 = vrot.lane.b32.xlu2 %v866_v8, %s1786_s13  ;;  %959 = vrot.lane.b32.xlu1 %v2067_v11, %s1786_s13 }
 0x370   : > { %v766_v17 = vpop.permute.xlu0 %765 }
 0x371   : > { %v786_v57 = vadd.f32 %v766_v17, %v2041_v53 }
 0x373   : > { %v1535_v14 = vpop.eup %1534  ;;  %v1355_v15 = vmul.f32 -1.442695, %v786_v57 }
 0x374   : > { %v820_v19 = vadd.f32 1.0, %v1535_v14 }
 0x375   : > { %1536 = vpow2.f32 %v1355_v15 }
 0x376   : > { %1538 = vrcp.f32 %v820_v19  ;;  %v909_v53 = vand.u32 2147483648, %v820_v19  ;;  %v907_v33 = vand.u32 2147483647, %v820_v19  ;;  %vm903_vm14 = vweird.f32 %v820_v19 }
 0x377   : > { %961 = vrot.lane.b32.xlu2 %v2069_v13, %s1786_s13 }
 0x378   : > { %v768_v16 = vpop.permute.xlu1 %767  ;;  %v910_v51 = vor.u32 1.1754944e-38, %v909_v53  ;;  %vm908_vm1 = vcmp.eq.f32.partialorder %v907_v33, 8.507059e+37 }
 0x379   : > { %v787_v23 = vadd.f32 %v768_v16, %v2045_v55 }
 0x37b   : > { %v1537_v47 = vpop.eup %1536  ;;  %v1356_v24 = vmul.f32 -1.442695, %v787_v23 }
 0x37c   : > { %v1539_v26 = vpop.eup %1538  ;;  %v818_v49 = vadd.f32 1.0, %v1537_v47 }
 0x37d   : > { %1540 = vpow2.f32 %v1356_v24  ;;  %v899_v11 = vmul.f32 %v1539_v26, %v820_v19  ;;  %vm904_vm13 = vweird.f32 %v1539_v26 }
 0x37e   : > { %1542 = vrcp.f32 %v818_v49  ;;  %vm905_vm15 = vmor %vm903_vm14, %vm904_vm13  ;;  %v879_v52 = vand.u32 2147483648, %v818_v49  ;;  %v877_v58 = vand.u32 2147483647, %v818_v49  ;;  %vm873_vm3 = vweird.f32 %v818_v49 }
 0x37f   : > { %v900_v30 = vsub.f32 1.0, %v899_v11  ;;  %963 = vrot.lane.b32.xlu2 %v2081_v40, %s1786_s13 }
 0x380   : > { %v880_v0 = vor.u32 1.1754944e-38, %v879_v52  ;;  %vm878_vm5 = vcmp.eq.f32.partialorder %v877_v58, 8.507059e+37  ;;  %v1407_v52 = vld [vmem:[#allocation10 + $0x8] sm:$0xff] }
 0x381   : > { %v901_v31 = vmul.f32 %v1539_v26, %v900_v30 }
 0x383   : > { %v1541_v37 = vpop.eup %1540  ;;  %v902_v13 = vadd.f32 %v1539_v26, %v901_v31 }
 0x384   : > { %v1543_v38 = vpop.eup %1542  ;;  %v819_v55 = vadd.f32 1.0, %v1541_v37  ;;  %v1409_v37 = vld [vmem:[#allocation10 + $0x18] sm:$0xff] }
 0x385   : > { %v906_v45 = vsel %vm905_vm15, %v1539_v26, %v902_v13  ;;  %v869_v46 = vmul.f32 %v1543_v38, %v818_v49  ;;  %vm874_vm2 = vweird.f32 %v1543_v38  ;;  %1087 = vmatpush.bf16.msra.mxu3 %v1409_v37 }
 0x386   : > { %1544 = vrcp.f32 %v819_v55  ;;  %v911_v48 = vsel %vm908_vm1, %v910_v51, %v906_v45  ;;  %vm875_vm4 = vmor %vm873_vm3, %vm874_vm2  ;;  %v894_v7 = vand.u32 2147483648, %v819_v55  ;;  %v892_v10 = vand.u32 2147483647, %v819_v55 }
 0x387   : > { %1001 = vrot.lane.b32.xlu1 %v911_v48, %s1786_s13  ;;  %v870_v50 = vsub.f32 1.0, %v869_v46  ;;  %vm888_vm7 = vweird.f32 %v819_v55  ;;  %v1408_v48 = vld [vmem:[#allocation10 + $0x10] sm:$0xff] }
 0x388   : > { %v772_v40 = vpop.permute.xlu0 %771  ;;  %v895_v57 = vor.u32 1.1754944e-38, %v894_v7  ;;  %vm893_vm9 = vcmp.eq.f32.partialorder %v892_v10, 8.507059e+37 }
 0x389   : > { %v789_v54 = vadd.f32 %v772_v40, %v2053_v59  ;;  %v871_v56 = vmul.f32 %v1543_v38, %v870_v50  ;;  %1088 = vmatpush.bf16.msra.mxu3 %v1408_v48 }
 0x38b   : > { %v1358_v60 = vmul.f32 -1.442695, %v789_v54  ;;  %v872_v62 = vadd.f32 %v1543_v38, %v871_v56  ;;  %v1406_v54 = vld [vmem:[#allocation10] sm:$0xff]  ;;  %v952_v56 = vpop.permute.xlu2 %951 }
 0x38c   : > { %v1545_v63 = vpop.eup %1544 }
 0x38d   : > { %1546 = vpow2.f32 %v1358_v60  ;;  %v876_v1 = vsel %vm875_vm4, %v1543_v38, %v872_v62  ;;  %v884_v2 = vmul.f32 %v1545_v63, %v819_v55  ;;  %vm889_vm6 = vweird.f32 %v1545_v63  ;;  %1089 = vmatpush.bf16.msra.mxu3 %v1407_v52 }
 0x38e   : > { %v881_v3 = vsel %vm878_vm5, %v880_v0, %v876_v1  ;;  %vm890_vm8 = vmor %vm888_vm7, %vm889_vm6 }
 0x38f   : > { %997 = vrot.lane.b32.xlu0 %v881_v3, %s1786_s13  ;;  %v885_v4 = vsub.f32 1.0, %v884_v2 }
 0x390   : > { %v774_v5 = vpop.permute.xlu1 %773  ;;  %v954_v58 = vpop.permute.xlu0 %953 }
 0x391   : > { %v790_v59 = vadd.f32 %v774_v5, %v2057_v61  ;;  %v886_v9 = vmul.f32 %v1545_v63, %v885_v4  ;;  %1090 = vmatpush.bf16.msra.mxu3 %v1406_v54  ;;  %v976_v62 = vadd.f32 %v954_v58, %v525_v22 }
 0x393   : > { %v1547_v6 = vpop.eup %1546  ;;  %v1359_v12 = vmul.f32 -1.442695, %v790_v59  ;;  %v887_v8 = vadd.f32 %v1545_v63, %v886_v9 }
 0x394   : > { %v821_v17 = vadd.f32 1.0, %v1547_v6 }
 0x395   : > { %1548 = vpow2.f32 %v1359_v12  ;;  %v891_v14 = vsel %vm890_vm8, %v1545_v63, %v887_v8  ;;  %v975_v63 = vadd.f32 %v952_v56, %v524_v21 }
 0x396   : > { %1550 = vrcp.f32 %v821_v17  ;;  %v896_v15 = vsel %vm893_vm9, %v895_v57, %v891_v14  ;;  %v924_v24 = vand.u32 2147483648, %v821_v17  ;;  %v922_v49 = vand.u32 2147483647, %v821_v17 }
 0x397   : > { %999 = vrot.lane.b32.xlu0 %v896_v15, %s1786_s13  ;;  %vm918_vm11 = vweird.f32 %v821_v17 }
 0x398   : > { %v925_v53 = vor.u32 1.1754944e-38, %v924_v24  ;;  %vm923_vm13 = vcmp.eq.f32.partialorder %v922_v49, 8.507059e+37  ;;  %v956_v7 = vpop.permute.xlu0 %955 }
 0x399   : > { %v977_v10 = vadd.f32 %v956_v7, %v526_v28 }
 0x39b   : > { %v1549_v19 = vpop.eup %1548 }
 0x39c   : > { %v1551_v16 = vpop.eup %1550  ;;  %v822_v61 = vadd.f32 1.0, %v1549_v19 }
 0x39d   : > { %v914_v23 = vmul.f32 %v1551_v16, %v821_v17  ;;  %vm919_vm10 = vweird.f32 %v1551_v16 }
 0x39e   : > { %1552 = vrcp.f32 %v822_v61  ;;  %vm920_vm12 = vmor %vm918_vm11, %vm919_vm10  ;;  %v937_v51 = vand.u32 2147483647, %v822_v61  ;;  %vm933_vm15 = vweird.f32 %v822_v61 }
 0x39f   : > { %965 = vrot.lane.b32.xlu0 %v2083_v44, %s1786_s13  ;;  %v915_v47 = vsub.f32 1.0, %v914_v23  ;;  %v939_v44 = vand.u32 2147483648, %v822_v61 }
 0x3a0   : > { %vm938_vm2 = vcmp.eq.f32.partialorder %v937_v51, 8.507059e+37 }
 0x3a1   : > { %v916_v26 = vmul.f32 %v1551_v16, %v915_v47  ;;  %v940_v46 = vor.u32 1.1754944e-38, %v939_v44 }
 0x3a3   : > { %v917_v11 = vadd.f32 %v1551_v16, %v916_v26 }
 0x3a4   : > { %v1553_v30 = vpop.eup %1552 }
 0x3a5   : > { %v921_v31 = vsel %vm920_vm12, %v1551_v16, %v917_v11  ;;  %v929_v33 = vmul.f32 %v1553_v30, %v822_v61  ;;  %vm934_vm14 = vweird.f32 %v1553_v30 }
 0x3a6   : > { %v926_v13 = vsel %vm923_vm13, %v925_v53, %v921_v31  ;;  %vm935_vm1 = vmor %vm933_vm15, %vm934_vm14  ;;  %v1505_v53 = vld [vmem:[%s2193_s7] ss:$0 sm:$0xff] }
 0x3a7   : > { %1003 = vrot.lane.b32.xlu1 %v926_v13, %s1786_s13  ;;  %v930_v38 = vsub.f32 1.0, %v929_v33 }
 0x3a9   : > { %v931_v55 = vmul.f32 %v1553_v30, %v930_v38 }
 0x3ab   : > { %v932_v45 = vadd.f32 %v1553_v30, %v931_v55 }
 0x3ad   : > { %v936_v50 = vsel %vm935_vm1, %v1553_v30, %v932_v45 }
 0x3ae   : > { %v941_v40 = vsel %vm938_vm2, %v940_v46, %v936_v50 }
 0x3af   : > { %1005 = vrot.lane.b32.xlu2 %v941_v40, %s1786_s13 }
 0x3c1   : > { %v994_v60 = vpop.permute.xlu2 %993 }
 0x3c2   : > { %v1016_v0 = vadd.f32 %v994_v60, %v976_v62 }
 0x3c4   : > { %v1024_v3 = vmax.f32 %v1016_v0, 0.0 }
 0x3c9   : > { %v996_v9 = vpop.permute.xlu2 %995 }
 0x3ca   : > { %v1017_v6 = vadd.f32 %v996_v9, %v977_v10 }
 0x3cc   : > { %v1025_v22 = vmax.f32 %v1017_v6, 0.0 }
 0x3d1   : > { %v992_v1 = vpop.permute.xlu1 %991  ;;  %v962_v57 = vpop.permute.xlu2 %961 }
 0x3d2   : > { %v1015_v2 = vadd.f32 %v992_v1, %v975_v63  ;;  %v980_v25 = vadd.f32 %v962_v57, %v529_v36 }
 0x3d4   : > { %v1023_v4 = vmax.f32 %v1015_v2, 0.0 }
 0x3d6   : > { %v1031_v5 = vpack.c.bf16 %v1024_v3, %v1023_v4 }
 0x3d8   : > { %1376 = vmatmul.msk.bf16.vlgmr.msra.gmra.mxu3 %vm572_vm0, %v1031_v5 }
 0x3d9   : > { %v958_v59 = vpop.permute.xlu1 %957  ;;  %v964_v23 = vpop.permute.xlu2 %963 }
 0x3da   : > { %v978_v20 = vadd.f32 %v958_v59, %v527_v29  ;;  %v981_v26 = vadd.f32 %v964_v23, %v530_v41 }
 0x3e1   : > { %v960_v8 = vpop.permute.xlu1 %959 }
 0x3e2   : > { %v979_v15 = vadd.f32 %v960_v8, %v528_v34 }
 0x3f9   : > { %v1002_v19 = vpop.permute.xlu1 %1001 }
 0x3fa   : > { %v1020_v27 = vadd.f32 %v1002_v19, %v980_v25 }
 0x3fc   : > { %v1028_v16 = vmax.f32 %v1020_v27, 0.0 }
 0x401   : > { %v998_v18 = vpop.permute.xlu0 %997 }
 0x402   : > { %v1018_v21 = vadd.f32 %v998_v18, %v978_v20 }
 0x404   : > { %v1026_v12 = vmax.f32 %v1018_v21, 0.0 }
 0x406   : > { %v1032_v17 = vpack.c.bf16 %v1026_v12, %v1025_v22 }
 0x408   : > { %1377 = vmatmul.msk.bf16.gmra.mxu3 %vm572_vm0, %v1032_v17 }
 0x409   : > { %v1000_v14 = vpop.permute.xlu0 %999  ;;  %v1006_v35 = vpop.permute.xlu2 %1005 }
 0x40a   : > { %v1019_v28 = vadd.f32 %v1000_v14, %v979_v15 }
 0x40c   : > { %v1027_v29 = vmax.f32 %v1019_v28, 0.0 }
 0x40e   : > { %v1033_v61 = vpack.c.bf16 %v1028_v16, %v1027_v29 }
 0x411   : > { %v966_v47 = vpop.permute.xlu0 %965 }
 0x412   : > { %v982_v32 = vadd.f32 %v966_v47, %v531_v43 }
 0x414   : > { %v1022_v36 = vadd.f32 %v1006_v35, %v982_v32 }
 0x416   : > { %v1030_v11 = vmax.f32 %v1022_v36, 0.0 }
 0x418   : > { %1378 = vmatmul.msk.bf16.gmra.mxu3 %vm572_vm0, %v1033_v61 }
 0x419   : > { %v1004_v24 = vpop.permute.xlu1 %1003 }
 0x41a   : > { %v1021_v34 = vadd.f32 %v1004_v24, %v981_v26 }
 0x41c   : > { %v1029_v49 = vmax.f32 %v1021_v34, 0.0 }
 0x41e   : > { %v1034_v30 = vpack.c.bf16 %v1030_v11, %v1029_v49 }
 0x428   : > { %1379 = vmatmul.msk.bf16.gmra.mxu3 %vm572_vm0, %v1034_v30 }
 0x45b   : > { %v1092_v31 = vpop.f32.mrf.mxu3 }
 0x45c   : > { %v1093_v33 = vadd.f32 %v1505_v53, %v1092_v31 }
 0x45e   : > { %1112 = vst [vmem:[%s391_s25] sm:$0xff] %v1093_v33 }
 0x463   : > { %v1094_v39 = vpop.f32.mrf.mxu3 }
 0x464   : > { %v1095_v41 = vadd.f32 %v1505_v53, %v1094_v39 }
 0x466   : > { %1113 = vst [vmem:[%s391_s25 + $0x8] sm:$0xff] %v1095_v41 }
 0x48b   : > { %v1097_v42 = vpop.f32.mrf.mxu3 }
 0x48c   : > { %v1098_v43 = vadd.f32 %v1505_v53, %v1097_v42 }
 0x48e   : > { %1114 = vst [vmem:[%s391_s25 + $0x10] sm:$0xff] %v1098_v43 }
 0x493   : > { %v1099_v37 = vpop.f32.mrf.mxu3 }
 0x494   : > { %v1100_v13 = vadd.f32 %v1505_v53, %v1099_v37 }
 0x496   : > { %1115 = vst [vmem:[%s391_s25 + $0x18] sm:$0xff] %v1100_v13 }
 0x49b   : > { %v1102_v38 = vpop.f32.mrf.mxu3 }
 0x49c   : > { %v1103_v44 = vadd.f32 %v1505_v53, %v1102_v38 }
 0x49e   : > { %1116 = vst [vmem:[%s391_s25 + $0x20] sm:$0xff] %v1103_v44 }
 0x4a3   : > { %v1104_v55 = vpop.f32.mrf.mxu3 }
 0x4a4   : > { %v1105_v51 = vadd.f32 %v1505_v53, %v1104_v55 }
 0x4a6   : > { %1117 = vst [vmem:[%s391_s25 + $0x28] sm:$0xff] %v1105_v51 }
 0x4ab   : > { %v1107_v45 = vpop.f32.mrf.mxu3 }
 0x4ac   : > { %v1108_v46 = vadd.f32 %v1505_v53, %v1107_v45 }
 0x4ae   : > { %1118 = vst [vmem:[%s391_s25 + $0x30] sm:$0xff] %v1108_v46 }
 0x4b3   : > { %v1109_v48 = vpop.f32.mrf.mxu3 }
 0x4b4   : > { %v1110_v50 = vadd.f32 %v1505_v53, %v1109_v48 }
 0x4b6   : > { %1119 = vst [vmem:[%s391_s25 + $0x38] sm:$0xff] %v1110_v50 }
 0x4b7   : > { %1731 = shalt.err (!%p1728_p10)
}
 0x4b8   : > { %s1787_s18 = smov 128   ;;  %s1788_s25 = smov 8  }
 0x4b9   : > { %1429 = dma.vmem_to_hbm [thread:$0]  (%p1930_p3), %s1134_s17, 1024, %s1136_s11, %s1121_s16, %s1787_s18, %s1787_s18, %s1788_s25  }
 0x4ba PF: > { %s1150_s19 = sand.u32 1, %s1766_s27   ;;  %p2209_p12 = scmp.ge.s32.totalorder %s1778_s30, 2 }
 0x4bb   : > { %s1151_s22 = scalar_lea.sflag [#allocation4], %s1150_s19 }
 0x4bc   : > { %p1449_p13 = pnand %p2209_p12, %p1869_p6 }
 0x4be   : > { %p1450_p0 = pneg %p1449_p13 }
 0x4c0   : > { %1761 = dma.done.wait (%p1450_p0), %s1151_s22, 1024  }
 0x4c1   : > { %1763 = vsyncadd (%p1450_p0), %s1151_s22, 4294966272  ;;  %p23_p5 = scmp.ge.s32.totalorder %s1920_s26, 4   ;;  %s2210_s27 = smov %s1770_s28 }
 0x4c2   : > { %s2211_s28 = smov %s1774_s29  ;;  %s2212_s29 = smov %s1936_s15 }
 0x4c3   : > { %s2213_s30 = smov %s1920_s26  ;;  %25 = sbr.rel (!%p23_p5) target bundleno = 10 (0xa), region = 113 }
 0x4c8   :  { %1157 = vsyncpa [#allocation3], 1 }
 0x4c9   :  { %1159 = vsyncpa [#allocation3 + $0x1], 1 }
 0x4ca   :  { %1160 = vsyncpa [#allocation6], 1 }
 0x4cb   :  { %1161 = vsyncpa [#allocation9], 1 }
 0x4cc   :  { %1162 = vsyncpa [#allocation4], 1 }
 0x4cd   :  { %1164 = vsyncpa [#allocation4 + $0x1], 1 }

</bundles_post_ra>
